<compile_context>
chip_gen: v7x
topology: tpu7x:2x2x1
jax: 0.10.0
libtpu: 0.0.40
codegen_flags: <defaults>
</compile_context>

<pallas_src>
import functools

import jax
import jax.numpy as jnp
from jax.experimental import pallas as pl
from jax.experimental.pallas import tpu as pltpu

_NEG_FILL = -1e9  # finite "minus infinity" for padded class lanes / rows


def _round_up(x, m):
    return ((x + m - 1) // m) * m


def _truncated_loss_kernel(logits_ref, target_ref, out_ref, *, threshold):
    # logits_ref: (TB, Cp) native dtype (e.g. bf16) -> upcast here, not in wrapper
    # target_ref: (TB, 1)  int32 (padded rows carry -1 -> contribute 0)
    # out_ref:    (8,  Cp) f32   lane-dense per-block partial sums
    x = logits_ref[...].astype(jnp.float32)
    t = target_ref[...]

    # log-sum-exp over classes (numerically stable)
    m = jnp.max(x, axis=-1, keepdims=True)
    e = jnp.exp(x - m)
    s = jnp.sum(e, axis=-1, keepdims=True)
    lse = m + jnp.log(s)

    # one-hot(target) via iota compare; padded rows (target == -1) never match
    cls = jax.lax.broadcasted_iota(jnp.int32, x.shape, 1)
    is_target = cls == t

    # p[i, c] < threshold  <=>  e[i, c] < threshold * sum_e[i]
    keep = e < (jnp.float32(threshold) * s)

    # -y * log(p_trunc): only the target column contributes, and only when its
    # probability is below the threshold;  -log(p) = lse - x.
    term = jnp.where(is_target & keep, lse - x, jnp.float32(0.0))

    # Fold the TB rows down to an (8, Cp) tile-aligned partial (sublane-tile
    # aligned reshape -> pure VPU adds, fully unmasked output stores).
    tb, cp = term.shape
    out_ref[...] = jnp.sum(term.reshape(tb // 8, 8, cp), axis=0)


def truncated_loss(logits, target, *, threshold=0.8, batch_tile=None):
    """logits: (N, C) float (any float dtype); target: (N,) int. Scalar f32 loss."""
    N, C = logits.shape
    C_pad = _round_up(C, 128)

    if batch_tile is None:
        # A few (TB, C_pad) f32 temporaries live in VMEM; keep each ~<=4 MiB.
        budget_rows = max(8, (4 * 1024 * 1024) // (C_pad * 4))
        batch_tile = min(512, budget_rows, _round_up(N, 8))
    batch_tile = max(8, (int(batch_tile) // 8) * 8)

    N_pad = _round_up(N, batch_tile)
    num_blocks = N_pad // batch_tile

    # Pad classes (lanes) with a large-negative finite filler and pad the batch
    # with dummy rows whose target is -1 (they contribute exactly 0).
    logits_p = logits
    if (N_pad, C_pad) != (N, C):
        logits_p = jnp.pad(
            logits, ((0, N_pad - N), (0, C_pad - C)), constant_values=_NEG_FILL
        )
    target_p = jnp.pad(
        target.astype(jnp.int32), (0, N_pad - N), constant_values=-1
    ).reshape(N_pad, 1)

    kernel = functools.partial(_truncated_loss_kernel, threshold=float(threshold))

    partials = pl.pallas_call(
        kernel,
        out_shape=jax.ShapeDtypeStruct((num_blocks * 8, C_pad), jnp.float32),
        grid_spec=pltpu.PrefetchScalarGridSpec(
            num_scalar_prefetch=0,
            grid=(num_blocks,),
            in_specs=[
                pl.BlockSpec((batch_tile, C_pad), lambda i: (i, 0)),
                pl.BlockSpec((batch_tile, 1), lambda i: (i, 0)),
            ],
            out_specs=pl.BlockSpec((8, C_pad), lambda i: (i, 0)),
        ),
        compiler_params=pltpu.CompilerParams(
            dimension_semantics=("parallel",),
            vmem_limit_bytes=32 * 1024 * 1024,
        ),
    )(logits_p, target_p)

    # Tiny lane-dense partial tensor; finish the reduction + 1/N scale in JAX.
    return jnp.sum(partials) / jnp.float32(N)


def _reference_loss(logits, target, threshold=0.8):
    """Plain-JAX reference mirroring the PyTorch module."""
    N, C = logits.shape
    p = jax.nn.softmax(logits.astype(jnp.float32), axis=1)
    p_trunc = jnp.where(p < threshold, p, 1.0)
    y = jax.nn.one_hot(target, C, dtype=jnp.float32)
    return jnp.sum(-y * jnp.log(p_trunc)) / float(N)


if __name__ == "__main__":
    key = jax.random.PRNGKey(0)
    k1, k2, k3, k4 = jax.random.split(key, 4)

    # Case 1: small aligned shapes, f32.
    N1, C1 = 8, 32
    logits1 = jax.random.normal(k1, (N1, C1), dtype=jnp.float32) * 3.0
    target1 = jax.random.randint(k2, (N1,), 0, C1, dtype=jnp.int32)
    loss1 = jax.block_until_ready(truncated_loss(logits1, target1, threshold=0.8))
    ref1 = jax.block_until_ready(_reference_loss(logits1, target1, threshold=0.8))
    assert jnp.allclose(loss1, ref1, rtol=1e-5, atol=1e-5), (loss1, ref1)

    # Case 2: unaligned N and C + bf16 input (exercises lane/row padding and
    # the no-wrapper-upcast path).
    N2, C2 = 10, 100
    logits2 = (jax.random.normal(k3, (N2, C2), dtype=jnp.float32) * 3.0).astype(
        jnp.bfloat16
    )
    target2 = jax.random.randint(k4, (N2,), 0, C2, dtype=jnp.int32)
    loss2 = jax.block_until_ready(truncated_loss(logits2, target2, threshold=0.8))
    ref2 = jax.block_until_ready(
        _reference_loss(logits2.astype(jnp.float32), target2, threshold=0.8)
    )
    assert jnp.allclose(loss2, ref2, rtol=1e-4, atol=1e-4), (loss2, ref2)

    print("KERNEL_OK")
</pallas_src>

<mosaic_0001>
module attributes {stable_mosaic.version = 11 : i64} {
  func.func @_truncated_loss_kernel(%arg0: i32, %arg1: memref<8x128xf32, #tpu.memory_space<vmem>>, %arg2: memref<8x1xi32, #tpu.memory_space<vmem>>, %arg3: memref<8x128xf32, #tpu.memory_space<vmem>>) attributes {dimension_semantics = [#tpu.dimension_semantics<parallel>], iteration_bounds = array<i64: 1>, scalar_prefetch = 0 : i64, scratch_operands = 0 : i64, tpu.core_type = #tpu.core_type<tc>, window_params = [{transform_indices = @transform_0, window_bounds = array<i64: 8, 128>}, {transform_indices = @transform_1, window_bounds = array<i64: 8, 1>}, {transform_indices = @transform_2, window_bounds = array<i64: 8, 128>}]} {
    %c0 = arith.constant 0 : index
    %c0_0 = arith.constant 0 : index
    %0 = vector.load %arg1[%c0, %c0_0] : memref<8x128xf32, #tpu.memory_space<vmem>>, vector<8x128xf32>
    %c0_1 = arith.constant 0 : index
    %c0_2 = arith.constant 0 : index
    %1 = vector.load %arg2[%c0_1, %c0_2] : memref<8x1xi32, #tpu.memory_space<vmem>>, vector<8x1xi32>
    %cst = arith.constant dense<0xFF800000> : vector<8xf32>
    %2 = vector.multi_reduction <maximumf>, %0, %cst [1] : vector<8x128xf32> to vector<8xf32>
    %3 = vector.shape_cast %2 : vector<8xf32> to vector<8x1xf32>
    %4 = vector.broadcast %3 : vector<8x1xf32> to vector<8x128xf32>
    %5 = arith.subf %0, %4 : vector<8x128xf32>
    %6 = math.exp %5 : vector<8x128xf32>
    %cst_3 = arith.constant dense<0.000000e+00> : vector<8xf32>
    %7 = vector.multi_reduction <add>, %6, %cst_3 [1] : vector<8x128xf32> to vector<8xf32>
    %8 = vector.shape_cast %7 : vector<8xf32> to vector<8x1xf32>
    %9 = math.log %8 : vector<8x1xf32>
    %10 = arith.addf %3, %9 : vector<8x1xf32>
    %11 = tpu.iota {dimensions = array<i32: 1>} : vector<8x128xi32>
    %12 = vector.broadcast %1 : vector<8x1xi32> to vector<8x128xi32>
    %13 = arith.cmpi eq, %11, %12 : vector<8x128xi32>
    %cst_4 = arith.constant 8.000000e-01 : f32
    %14 = vector.broadcast %cst_4 : f32 to vector<8x1xf32>
    %15 = arith.mulf %14, %8 : vector<8x1xf32>
    %16 = vector.broadcast %15 : vector<8x1xf32> to vector<8x128xf32>
    %17 = arith.cmpf olt, %6, %16 : vector<8x128xf32>
    %18 = arith.andi %13, %17 : vector<8x128xi1>
    %19 = vector.broadcast %10 : vector<8x1xf32> to vector<8x128xf32>
    %20 = arith.subf %19, %0 : vector<8x128xf32>
    %cst_5 = arith.constant 0.000000e+00 : f32
    %21 = vector.broadcast %cst_5 : f32 to vector<8x128xf32>
    %22 = arith.select %18, %20, %21 : vector<8x128xi1>, vector<8x128xf32>
    %23 = vector.shape_cast %22 : vector<8x128xf32> to vector<1x8x128xf32>
    %cst_6 = arith.constant dense<0.000000e+00> : vector<8x128xf32>
    %24 = vector.multi_reduction <add>, %23, %cst_6 [0] : vector<1x8x128xf32> to vector<8x128xf32>
    %c0_7 = arith.constant 0 : index
    %c0_8 = arith.constant 0 : index
    %25 = vector.load %arg3[%c0_7, %c0_8] : memref<8x128xf32, #tpu.memory_space<vmem>>, vector<8x128xf32>
    tpu.vector_store %arg3[%c0_7, %c0_8], %24 {strides = array<i32>} : memref<8x128xf32, #tpu.memory_space<vmem>>, vector<8x128xf32>,
    return
  }
  func.func @transform_0(%arg0: i32) -> (i32, i32) {
    %c0_i32 = arith.constant 0 : i32
    %c0_i32_0 = arith.constant 0 : i32
    return %arg0, %c0_i32 : i32, i32
  }
  func.func @transform_1(%arg0: i32) -> (i32, i32) {
    %c0_i32 = arith.constant 0 : i32
    %c0_i32_0 = arith.constant 0 : i32
    return %arg0, %c0_i32 : i32, i32
  }
  func.func @transform_2(%arg0: i32) -> (i32, i32) {
    %c0_i32 = arith.constant 0 : i32
    %c0_i32_0 = arith.constant 0 : i32
    return %arg0, %c0_i32 : i32, i32
  }
}

</mosaic_0001>

<bundles_post_ra>
// kernel: tpu_custom_call.1
= control target key start
LH: loop header
LB: loop body
LE: loop exit
PB: predicated region body
PF: predicated region fallthrough
CT: control target
= control target key end

     0   :  { %s118_s0 = inlined_call_operand.vmem [shape: f32[8,128], index: 0, kind: input, shape index: {}]   ;;  %s119_s1 = inlined_call_operand.vmem [shape: s32[8,1], index: 1, kind: input, shape index: {}]   ;;  %s120_s2 = inlined_call_operand.hbm [shape: f32[8,128], index: 2, kind: output, shape index: {}]  }
   0x1   :  { %v12_v0 = vld [vmem:[%s118_s0] sm:$0xff] }
   0x2   :  { %7 = vsyncpa [#allocation3], 0  ;;  %14 = vmax.xlane.f32.xlu0 %v12_v0  ;;  %v13_v1 = vld [vmem:[%s119_s1] sm:$0xff]  ;;  %v83_v2 = vmov 0   ;;  %v24_v8 = vlaneseq  ;;  %s84_s0 = smov [#allocation2]  }
   0x3   :  { %53 = vset.pattern.permute.xlu1 %v83_v2  ;;  %54 = vset.pattern.permute.xlu0 %v83_v2  ;;  %s43_s1 = sshll.u32 %s84_s0, 4  ;;  %s44_s1 = int_to_ptr.vmem [resolvable:$true] %s43_s1 }
   0x4   :  { %27 = vperm.xlu1 %53, %v13_v1   ;;  %v25_v10 = vand.u32 127, %v24_v8  ;;  %s59_s13 = scalar_lea.vmem %s44_s1, 128  ;;  %p64_p1 = scmp.lt.s32.totalorder %s44_s1, %s44_s1 }
   0x5   :  { %p60_p0 = scmp.ne.s32.totalorder %s44_s1, %s59_s13  ;;  %p65_p2 = scmp.lt.s32.totalorder %s59_s13, %s59_s13 }
   0x7   :  { %p66_p3 = por %p65_p2, %p64_p1 }
   0x9   :  { %p67_p4 = pnand %p66_p3, %p60_p0 }
  0x83   :  { %v28_v12 = vpop.permute.xlu1 %27 }
  0x84   :  { %vm29_vm0 = vcmp.eq.s32.totalorder %v25_v10, %v28_v12 }
  0x8f   :  { %v15_v3 = vpop.xlane.xlu0 %14 }
  0x90   :  { %v16_v4 = vsub.f32 %v12_v0, %v15_v3 }
  0x92   :  { %v17_v5 = vmul.f32 1.442695, %v16_v4 }
  0x94   :  { %55 = vpow2.f32 %v17_v5 }
  0x9e   :  { %v56_v6 = vpop.eup %55 }
  0x9f   :  { %19 = vadd.xlane.f32.xlu0 %v56_v6 }
 0x12c   :  { %v20_v7 = vpop.xlane.xlu0 %19 }
 0x12d   :  { %57 = vlog2.f32 %v20_v7  ;;  %v30_v9 = vmul.f32 0.8, %v20_v7 }
 0x12f   :  { %vm31_vm1 = vcmp.lt.f32.partialorder %v56_v6, %v30_v9 }
 0x130   :  { %vm32_vm2 = vmand %vm29_vm0, %vm31_vm1 }
 0x137   :  { %v58_v11 = vpop.eup %57 }
 0x138   :  { %v22_v13 = vmul.f32 0.6931472, %v58_v11 }
 0x13a   :  { %v23_v14 = vadd.f32 %v22_v13, %v15_v3 }
 0x13c   :  { %v33_v15 = vsub.f32 %v23_v14, %v12_v0 }
 0x13e   :  { %v34_v16 = vsel %vm32_vm2, %v33_v15, 0.0 }
 0x13f   :  { %36 = vst [vmem:[#allocation2] sm:$0xff] %v34_v16 }
 0x140   :  { %70 = shalt.err (!%p67_p4)
}
 0x141   :  { %s71_s16 = scalar_lea.hbm %s120_s2, 128 }
 0x142   :  { %p72_p5 = scmp.ne.s32.totalorder %s120_s2, %s71_s16  ;;  %p75_p6 = scmp.lt.u32.totalorder %s71_s16, %s120_s2 }
 0x144   :  { %p77_p7 = pnand %p75_p6, %p72_p5 }
 0x146   :  { %80 = shalt.err (!%p77_p7)
}
 0x147   :  { %46 = dma.vmem_to_hbm [thread:$0]  %s44_s1, 128, %s120_s2, [#allocation3]  }
 0x148   :  { %81 = dma.done.wait [#allocation3], 128  }
 0x149   :  { %82 = vsyncadd [#allocation3], 4294967168 }
 0x14a   :  { %50 = vsyncpa [#allocation3], 1 }

</bundles_post_ra>
